<compile_context>
chip_gen: v5e
topology: v5e:2x2
jax: 0.10.0
libtpu: 0.0.40
codegen_flags: <defaults>
</compile_context>

<pallas_src>
import math

import jax
import jax.numpy as jnp
from jax.experimental import pallas as pl
from jax.experimental.pallas import tpu as pltpu

_LANE = 128
_LANE_W_CAP = 2048            # cap on the lane-dense row width
_TINY_BYTES = 2 << 20         # below this, plain jnp broadcast beats launch cost
_DEFAULT_BLOCK_BYTES = 4 << 20  # safe on v5e/v6e/v7x (2x double-buffered)


def _hist_kernel(theta_ref, out_ref):
    # theta_ref: (1, lane_w) resident VMEM row; out_ref: (row_block, lane_w) tile.
    out_ref[...] = jnp.broadcast_to(theta_ref[...], out_ref.shape)


def _sublane_multiple(itemsize):
    # Sublane packing granularity per dtype width.
    return {4: 8, 2: 16, 1: 32}.get(itemsize, 8)


def hist_model_forward(x, theta, *, block_bytes=_DEFAULT_BLOCK_BYTES,
                       force_pallas=False):
    """Pallas equivalent of HistModel.forward.

    x:     array whose leading dim is the batch size (values unused, as in ref).
    theta: (d,) parameter vector.
    Returns: (batch, d) array equal to theta broadcast over the batch.
    """
    batch = int(x.shape[0])
    d = int(theta.shape[0])
    itemsize = jnp.dtype(theta.dtype).itemsize
    out_bytes = batch * d * itemsize

    # Tiny problem: launch/step overhead dwarfs a few-MiB broadcast.
    if out_bytes < _TINY_BYTES and not force_pallas:
        return jnp.broadcast_to(theta[None, :], (batch, d))

    # --- choose a lane-dense layout when possible ---------------------------
    lane_w_dense = (d * _LANE) // math.gcd(d, _LANE)  # lcm(d, 128)
    if lane_w_dense <= _LANE_W_CAP and (batch * d) % lane_w_dense == 0:
        # View the row-major (batch, d) output as (rows, lane_w); each row of
        # the view holds lane_w // d consecutive copies of theta, so the
        # reshape back to (batch, d) is a free row-major view.
        lane_w = lane_w_dense
        rows = (batch * d) // lane_w
        theta_row = jnp.tile(theta, lane_w // d).reshape(1, lane_w)
    else:
        # Fallback: keep (batch, d); block covers the full last dim.
        lane_w = d
        rows = batch
        theta_row = theta.reshape(1, d)

    # --- pick a row block ----------------------------------------------------
    sub = _sublane_multiple(itemsize)
    bytes_per_row = lane_w * itemsize
    row_block = max(sub, (block_bytes // bytes_per_row) // sub * sub)
    # Ensure >= 2 grid steps when rows allow it (keeps both v7x TCs busy).
    if rows >= 2 * sub:
        half = max(sub, (rows // 2) // sub * sub)
        row_block = min(row_block, half)
    row_block = min(row_block, rows)
    if row_block < rows:
        # Must be a sublane multiple unless it spans the whole dim.
        row_block = max(sub, (row_block // sub) * sub)

    n_blocks = pl.cdiv(rows, row_block)  # tail block clipped by Pallas

    out = pl.pallas_call(
        _hist_kernel,
        out_shape=jax.ShapeDtypeStruct((rows, lane_w), theta.dtype),
        grid_spec=pltpu.PrefetchScalarGridSpec(
            num_scalar_prefetch=0,
            grid=(n_blocks,),
            in_specs=[
                # theta row: same block every step => resident in VMEM.
                pl.BlockSpec((1, lane_w), lambda i: (0, 0)),
            ],
            out_specs=pl.BlockSpec((row_block, lane_w), lambda i: (i, 0)),
        ),
        compiler_params=pltpu.CompilerParams(
            dimension_semantics=("parallel",),
        ),
        cost_estimate=pl.CostEstimate(
            flops=0,
            transcendentals=0,
            bytes_accessed=out_bytes + lane_w * itemsize,
        ),
    )(theta_row)

    return out.reshape(batch, d)


def get_theta(theta):
    # Mirrors HistModel.get_theta (softmax over the parameter vector).
    return jax.nn.softmax(theta)


if __name__ == "__main__":
    key = jax.random.PRNGKey(0)
    k1, k2, k3 = jax.random.split(key, 3)

    # --- demo at the module's natural small shape (force the Pallas path) ---
    d = 32
    batch = 8
    theta = jnp.zeros((d,), dtype=jnp.float32)  # torch.nn.init.zeros_
    x = jax.random.randint(k1, (batch,), 0, d, dtype=jnp.int32)

    scores = hist_model_forward(x, theta, force_pallas=True)
    scores = jax.block_until_ready(scores)
    expected = jnp.broadcast_to(theta[None, :], (batch, d))
    assert scores.shape == (batch, d)
    assert scores.dtype == jnp.float32
    assert bool(jnp.all(scores == expected))

    # --- multi-block lane-dense path with a partial tail block --------------
    theta2 = jax.random.normal(k2, (d,), dtype=jnp.float32)
    batch2 = 1000  # rows=250 with lane_w=128 -> 8 blocks of 32, last partial
    x2 = jnp.zeros((batch2,), dtype=jnp.int32)
    scores2 = hist_model_forward(x2, theta2, block_bytes=16 * 1024,
                                 force_pallas=True)
    scores2 = jax.block_until_ready(scores2)
    expected2 = jnp.broadcast_to(theta2[None, :], (batch2, d))
    assert scores2.shape == (batch2, d)
    assert bool(jnp.all(scores2 == expected2))

    # --- lcm-based lane-dense path, d not a divisor of 128 (lane_w=640) -----
    d3, batch3 = 40, 16
    theta3 = jax.random.normal(k3, (d3,), dtype=jnp.float32)
    x3 = jnp.zeros((batch3,), dtype=jnp.int32)
    scores3 = hist_model_forward(x3, theta3, force_pallas=True)
    scores3 = jax.block_until_ready(scores3)
    expected3 = jnp.broadcast_to(theta3[None, :], (batch3, d3))
    assert bool(jnp.all(scores3 == expected3))

    # --- true fallback path (no lane-dense reshape exists) ------------------
    d4, batch4 = 40, 10
    theta4 = jnp.arange(d4, dtype=jnp.float32)
    x4 = jnp.zeros((batch4,), dtype=jnp.int32)
    scores4 = hist_model_forward(x4, theta4, force_pallas=True)
    scores4 = jax.block_until_ready(scores4)
    expected4 = jnp.broadcast_to(theta4[None, :], (batch4, d4))
    assert bool(jnp.all(scores4 == expected4))

    print("KERNEL_OK")
</pallas_src>

<mosaic_0001>
module attributes {stable_mosaic.version = 11 : i64} {
  func.func @_hist_kernel(%arg0: i32, %arg1: memref<1x128xf32, #tpu.memory_space<vmem>>, %arg2: memref<2x128xf32, #tpu.memory_space<vmem>>) attributes {dimension_semantics = [#tpu.dimension_semantics<parallel>], iteration_bounds = array<i64: 1>, scalar_prefetch = 0 : i64, scratch_operands = 0 : i64, tpu.core_type = #tpu.core_type<tc>, window_params = [{pipeline_mode = #tpu.pipeline_mode<synchronous>, transform_indices = @transform_0, window_bounds = array<i64: 1, 128>}, {transform_indices = @transform_1, window_bounds = array<i64: 2, 128>}]} {
    %c0 = arith.constant 0 : index
    %c0_0 = arith.constant 0 : index
    %0 = vector.load %arg1[%c0, %c0_0] : memref<1x128xf32, #tpu.memory_space<vmem>>, vector<1x128xf32>
    %1 = vector.shape_cast %0 : vector<1x128xf32> to vector<1x128xf32>
    %2 = vector.broadcast %1 : vector<1x128xf32> to vector<2x128xf32>
    %c0_1 = arith.constant 0 : index
    %c0_2 = arith.constant 0 : index
    %3 = vector.load %arg2[%c0_1, %c0_2] : memref<2x128xf32, #tpu.memory_space<vmem>>, vector<2x128xf32>
    tpu.vector_store %arg2[%c0_1, %c0_2], %2 {strides = array<i32>} : memref<2x128xf32, #tpu.memory_space<vmem>>, vector<2x128xf32>,
    return
  }
  func.func @transform_0(%arg0: i32) -> (i32, i32) {
    %c0_i32 = arith.constant 0 : i32
    %c0_i32_0 = arith.constant 0 : i32
    %c0_i32_1 = arith.constant 0 : i32
    return %c0_i32, %c0_i32_0 : i32, i32
  }
  func.func @transform_1(%arg0: i32) -> (i32, i32) {
    %c0_i32 = arith.constant 0 : i32
    %c0_i32_0 = arith.constant 0 : i32
    return %arg0, %c0_i32 : i32, i32
  }
}

</mosaic_0001>

<bundles_post_ra>
// kernel: tpu_custom_call.1
= control target key start
LH: loop header
LB: loop body
LE: loop exit
PB: predicated region body
PF: predicated region fallthrough
CT: control target
= control target key end

     0   :  { %6 = vsyncpa [#allocation3], 0  ;;  %s118_s0 = inlined_call_operand.hbm [shape: f32[1,128], index: 0, kind: input, shape index: {}]   ;;  %s119_s1 = inlined_call_operand.hbm [shape: f32[2,128], index: 1, kind: output, shape index: {}]  }
   0x1   :  { %7 = vsyncpa [#allocation4], 0  ;;  %s13_s8 = sshll.u32 %s118_s0, 4  ;;  %s100_s9 = smov [#allocation2]   ;;  %s14_s8 = int_to_ptr.hbm [resolvable:$true] %s13_s8 }
   0x2   :  { %s15_s10 = sshll.u32 %s100_s9, 4  ;;  %s16_s10 = int_to_ptr.vmem [resolvable:$true] %s15_s10 }
   0x3   :  { %18 = dma.hbm_to_vmem [thread:$0]  %s14_s8, 16, %s16_s10, [#allocation3]  }
   0x4   :  { %96 = dma.done.wait [#allocation3], 16  }
   0x5   :  { %97 = vsyncadd [#allocation3], 4294967280  ;;  %s101_s11 = smov [#allocation5]   ;;  %s35_s15 = sshll.u32 %s119_s1, 4  ;;  %v47_v0 = vld [vmem:[#allocation2] ss:$0 sm:$0xff]  ;;  %s36_s15 = int_to_ptr.hbm [resolvable:$true] %s35_s15 }
   0x6   :  { %s33_s12 = sshll.u32 %s101_s11, 4  ;;  %27 = vst [vmem:[#allocation5] sm:$0x3] %v47_v0  ;;  %s34_s12 = int_to_ptr.vmem [resolvable:$true] %s33_s12 }
   0x7   :  { %38 = dma.vmem_to_hbm [thread:$0]  %s34_s12, 32, %s36_s15, [#allocation4]  }
   0x8   :  { %98 = dma.done.wait [#allocation4], 32  }
   0x9   :  { %99 = vsyncadd [#allocation4], 4294967264 }
   0xa   :  { %43 = vsyncpa [#allocation3], 1 }
   0xb   :  { %44 = vsyncpa [#allocation4], 1 }

</bundles_post_ra>
